<compile_context>
chip_gen: v5e
topology: v5e:2x2
jax: 0.10.0
libtpu: 0.0.40
codegen_flags: <defaults>
</compile_context>

<pallas_src>
import functools

import jax
import jax.numpy as jnp
from jax.experimental import pallas as pl
from jax.experimental.pallas import tpu as pltpu


def _round_up(x, m):
    return ((x + m - 1) // m) * m


# ----------------------------------------------------------------------------- kernel

def posterior_encoder_kernel(
    x_ref, mask_ref, bt_ref, bs_ref,
    pre_w_ref, pre_b_ref,
    in_wt_ref, in_ws_ref,
    res_w_ref, res_b_ref, skip_w_ref, skip_b_ref,
    proj_w_ref, proj_b_ref,
    tap_off_ref,
    stats_ref,
    hp_ref, skip_ref,
    *, hidden, kernel_size, dilation_rate, n_layers, pad_align):
    """One grid step = (batch element b, WN layer l). State carried in VMEM scratch."""
    H, K, L = hidden, kernel_size, n_layers
    T = x_ref.shape[1]
    layer = pl.program_id(1)

    mask = mask_ref[0]                                     # (T, 1) f32 (lane-broadcast on use)
    center = pl.ds(pad_align, T)

    # ---- per-batch init (layer 0): zero halo rows only, pre 1x1 conv, clear skip acc ----
    @pl.when(layer == 0)
    def _():
        if pad_align > 0:
            zeros_halo = jnp.zeros((pad_align, H), jnp.bfloat16)
            hp_ref[pl.ds(0, pad_align), :] = zeros_halo
            hp_ref[pl.ds(pad_align + T, pad_align), :] = zeros_halo
        h0 = jnp.dot(x_ref[0], pre_w_ref[...],
                     preferred_element_type=jnp.float32) + pre_b_ref[...]
        hp_ref[center, :] = (h0 * mask).astype(jnp.bfloat16)
        skip_ref[...] = jnp.zeros_like(skip_ref)

    # ---- dilated conv taps read straight from the zero-haloed bf16 residual buffer ------
    if dilation_rate == 1:
        base = pad_align - (K - 1) // 2                    # static offsets (aligned center)
        taps = [hp_ref[pl.ds(base + k, T), :] for k in range(K)]
    else:
        taps = [hp_ref[pl.ds(tap_off_ref[layer, k], T), :] for k in range(K)]
    stacked = jnp.concatenate(taps, axis=1)                # (T, K*H) bf16: one matmul / half

    # cond + bias pre-folded into bt/bs; f32 accumulation, f32 gate math (v5e-safe)
    x_t = jnp.dot(stacked, in_wt_ref[0], preferred_element_type=jnp.float32) + bt_ref[0, 0]
    x_s = jnp.dot(stacked, in_ws_ref[0], preferred_element_type=jnp.float32) + bs_ref[0, 0]
    acts = (jnp.tanh(x_t) * jax.nn.sigmoid(x_s)).astype(jnp.bfloat16)

    # ---- skip accumulation (last layer's skip_w already holds the skip-only weight) -----
    skip_ref[...] = skip_ref[...] + (
        jnp.dot(acts, skip_w_ref[0], preferred_element_type=jnp.float32) + skip_b_ref[0])

    # ---- residual update in place (all layers but the last) -----------------------------
    @pl.when(layer < L - 1)
    def _():
        res = jnp.dot(acts, res_w_ref[0],
                      preferred_element_type=jnp.float32) + res_b_ref[0]
        h_new = (hp_ref[center, :].astype(jnp.float32) + res) * mask
        hp_ref[center, :] = h_new.astype(jnp.bfloat16)

    # ---- final 1x1 projection + store (last layer only; output block is per-b resident) -
    @pl.when(layer == L - 1)
    def _():
        x_enc = (skip_ref[...] * mask).astype(jnp.bfloat16)
        stats = jnp.dot(x_enc, proj_w_ref[...],
                        preferred_element_type=jnp.float32) + proj_b_ref[...]
        stats_ref[0] = stats * mask


# ----------------------------------------------------------------------------- wrapper

def _prep_params(params, g, *, hidden, kernel_size, n_layers, out_channels):
    """Fold the PyTorch-layout params into kernel-friendly, lane-dense bf16 tensors."""
    H, K, L = hidden, kernel_size, n_layers
    bf = jnp.bfloat16
    B = g.shape[0]

    in_w = params["in_w"]                                    # (L, K, H, 2H)
    in_wt = in_w[..., :H].reshape(L, K * H, H).astype(bf)    # tanh half
    in_ws = in_w[..., H:].reshape(L, K * H, H).astype(bf)    # sigmoid half

    rs_w, rs_b = params["rs_w"], params["rs_b"]              # (L, H, 2H), (L, 1, 2H)
    res_w = rs_w[:, :, :H].astype(bf)                        # last layer's slot unused
    res_b = rs_b[:, :, :H]
    skip_w = rs_w[:, :, H:].at[L - 1].set(rs_w[L - 1, :, :H]).astype(bf)
    skip_b = rs_b[:, :, H:].at[L - 1].set(rs_b[L - 1, :, :H])

    # WN cond layer (1x1 conv over a length-1 g) hoisted out of the kernel and pre-folded
    # with the per-layer input-conv bias -> single bt/bs tensors (one add per gate half).
    gc = jnp.einsum("bc,co->bo", g[:, 0, :], params["cond_w"]) + params["cond_b"]  # (B, 2HL)
    gc = gc.reshape(B, L, 2, H)
    in_b = params["in_b"].reshape(L, 2, H)
    bt = (gc[:, :, 0, :] + in_b[None, :, 0, :])[:, :, None, :]   # (B, L, 1, H)
    bs = (gc[:, :, 1, :] + in_b[None, :, 1, :])[:, :, None, :]

    two_out = 2 * out_channels
    cpad = two_out if two_out <= 128 else _round_up(two_out, 128)
    if cpad == two_out:
        proj_w = params["proj_w"].astype(bf)
        proj_b = params["proj_b"]
    else:
        proj_w = jnp.zeros((H, cpad), jnp.float32).at[:, :two_out].set(
            params["proj_w"]).astype(bf)
        proj_b = jnp.zeros((1, cpad), jnp.float32).at[:, :two_out].set(params["proj_b"])

    return dict(pre_w=params["pre_w"].astype(bf), pre_b=params["pre_b"],
                in_wt=in_wt, in_ws=in_ws, bt=bt, bs=bs,
                res_w=res_w, res_b=res_b, skip_w=skip_w, skip_b=skip_b,
                proj_w=proj_w, proj_b=proj_b, cpad=cpad)


def _vmem_limit_bytes():
    """Per-generation VMEM limit: ~3/4 of physical, capped at 100 MiB (96 MiB v5e/v6e, 48 MiB v7x)."""
    phys = 128 * 1024 * 1024
    try:
        phys = int(getattr(pltpu.get_tpu_info(), "vmem_capacity_bytes", phys))
    except Exception:
        pass
    return min(phys * 3 // 4, 100 * 1024 * 1024)


def posterior_encoder(x, x_mask, g, noise, params, *, hidden, kernel_size,
                      dilation_rate, n_layers, out_channels, noise_scale=1.0):
    """x: (B,T,Cin), x_mask: (B,T,1), g: (B,1,gin), noise: (B,T,out)  (channels-last)."""
    B, T, Cin = x.shape
    H, K, L = hidden, kernel_size, n_layers

    p = _prep_params(params, g, hidden=H, kernel_size=K, n_layers=L,
                     out_channels=out_channels)
    cpad = p["cpad"]

    pad_max = (dilation_rate ** (L - 1)) * (K - 1) // 2
    pad_align = _round_up(pad_max, 16) if pad_max > 0 else 0   # bf16 sublane packing = 16

    # Per-layer tap start offsets into the haloed buffer (only read when dilation_rate != 1).
    tap_off = jnp.asarray(
        [[pad_align - (dilation_rate ** i) * (K - 1) // 2 + k * (dilation_rate ** i)
          for k in range(K)] for i in range(L)],
        dtype=jnp.int32)                                        # (L, K)

    kern = functools.partial(
        posterior_encoder_kernel, hidden=H, kernel_size=K,
        dilation_rate=dilation_rate, n_layers=L, pad_align=pad_align)

    x16 = x.astype(jnp.bfloat16)

    def wspec(a):
        n = a.ndim
        return pl.BlockSpec(a.shape, lambda b, l, _n=n: (0,) * _n)

    # TODO(synk): for very long sequences, add a parallel time-tile grid axis with a
    # receptive-field halo so both v7x TensorCores stay busy at small B and per-core
    # x/stats/halo VMEM stays bounded; single-block T is fine at these sizes.
    stats_pad = pl.pallas_call(
        kern,
        out_shape=jax.ShapeDtypeStruct((B, T, cpad), jnp.float32),
        grid=(B, L),
        in_specs=[
            pl.BlockSpec((1, T, Cin), lambda b, l: (b, 0, 0)),      # x (used at layer 0)
            pl.BlockSpec((1, T, 1), lambda b, l: (b, 0, 0)),        # mask
            pl.BlockSpec((1, 1, 1, H), lambda b, l: (b, l, 0, 0)),  # bt = in_b(tanh) + cond(tanh)
            pl.BlockSpec((1, 1, 1, H), lambda b, l: (b, l, 0, 0)),  # bs = in_b(sig)  + cond(sig)
            wspec(p["pre_w"]), wspec(p["pre_b"]),
            pl.BlockSpec((1, K * H, H), lambda b, l: (l, 0, 0)),    # in_wt  (streamed per layer)
            pl.BlockSpec((1, K * H, H), lambda b, l: (l, 0, 0)),    # in_ws  (streamed per layer)
            pl.BlockSpec((1, H, H), lambda b, l: (l, 0, 0)),        # res_w
            pl.BlockSpec((1, 1, H), lambda b, l: (l, 0, 0)),        # res_b
            pl.BlockSpec((1, H, H), lambda b, l: (l, 0, 0)),        # skip_w
            pl.BlockSpec((1, 1, H), lambda b, l: (l, 0, 0)),        # skip_b
            wspec(p["proj_w"]), wspec(p["proj_b"]),
            pl.BlockSpec(memory_space=pltpu.MemorySpace.SMEM),      # tap offset table
        ],
        out_specs=pl.BlockSpec((1, T, cpad), lambda b, l: (b, 0, 0)),
        scratch_shapes=[
            pltpu.VMEM((T + 2 * pad_align, H), jnp.bfloat16),       # zero-haloed residual state
            pltpu.VMEM((T, H), jnp.float32),                        # skip accumulator
        ],
        compiler_params=pltpu.CompilerParams(
            dimension_semantics=("parallel", "arbitrary"),
            vmem_limit_bytes=_vmem_limit_bytes()),
    )(x16, x_mask, p["bt"], p["bs"],
      p["pre_w"], p["pre_b"],
      p["in_wt"], p["in_ws"],
      p["res_w"], p["res_b"], p["skip_w"], p["skip_b"],
      p["proj_w"], p["proj_b"], tap_off)

    # split + reparameterized sample in the wrapper (keeps the kernel output lane-dense)
    stats = stats_pad[..., :2 * out_channels]
    m = stats[..., :out_channels]
    logs = stats[..., out_channels:]
    z = m + noise * jnp.exp(logs) * x_mask * noise_scale
    return z, m, logs, x_mask


# ----------------------------------------------------------------------------- params

def init_params(key, in_channels, out_channels, hidden, kernel_size, n_layers, gin_channels):
    H, K, L = hidden, kernel_size, n_layers
    keys = jax.random.split(key, 10)
    s = 0.1
    nrm = lambda k, shp: jax.random.normal(k, shp, jnp.float32) * s
    # weight_norm is folded into the effective weights (synthetic init).
    return dict(
        pre_w=nrm(keys[0], (in_channels, H)),       # Conv1d(in,H,1):   h = x @ pre_w + pre_b
        pre_b=nrm(keys[1], (1, H)),
        cond_w=nrm(keys[2], (gin_channels, 2 * H * L)),
        cond_b=nrm(keys[3], (1, 2 * H * L)),
        in_w=nrm(keys[4], (L, K, H, 2 * H)),        # torch W[o,c,k] == in_w[l,k,c,o]
        in_b=nrm(keys[5], (L, 1, 2 * H)),
        rs_w=nrm(keys[6], (L, H, 2 * H)),           # last layer uses only first H output cols
        rs_b=nrm(keys[7], (L, 1, 2 * H)),
        proj_w=nrm(keys[8], (H, 2 * out_channels)),
        proj_b=nrm(keys[9], (1, 2 * out_channels)),
    )


# ----------------------------------------------------------------------------- pure-JAX reference (NCT layout, independent conv impl)

def ref_forward(x_nct, mask_n1t, g_nc1, noise_nct, params, *, hidden, kernel_size,
                dilation_rate, n_layers, out_channels, noise_scale=1.0):
    H, K, L = hidden, kernel_size, n_layers
    p = params
    h = jnp.einsum("co,bct->bot", p["pre_w"], x_nct) + p["pre_b"][0][None, :, None]
    h = h * mask_n1t
    gc = jnp.einsum("co,bcl->bol", p["cond_w"], g_nc1) + p["cond_b"][0][None, :, None]
    out = jnp.zeros_like(h)
    for i in range(L):
        d = dilation_rate ** i
        pad = d * (K - 1) // 2
        w = jnp.transpose(p["in_w"][i], (2, 1, 0))  # (2H, H, K)
        x_in = jax.lax.conv_general_dilated(
            h, w, (1,), [(pad, pad)], rhs_dilation=(d,),
            dimension_numbers=("NCH", "OIH", "NCH"))
        x_in = x_in + p["in_b"][i, 0][None, :, None]
        g_l = gc[:, i * 2 * H:(i + 1) * 2 * H, :]
        in_act = x_in + g_l
        acts = jnp.tanh(in_act[:, :H]) * jax.nn.sigmoid(in_act[:, H:])
        rs = jnp.einsum("co,bct->bot", p["rs_w"][i], acts) + p["rs_b"][i, 0][None, :, None]
        if i < L - 1:
            h = (h + rs[:, :H]) * mask_n1t
            out = out + rs[:, H:]
        else:
            out = out + rs[:, :H]
    x_enc = out * mask_n1t
    stats = jnp.einsum("co,bct->bot", p["proj_w"], x_enc) + p["proj_b"][0][None, :, None]
    stats = stats * mask_n1t
    m = stats[:, :out_channels]
    logs = stats[:, out_channels:]
    z = m + noise_nct * jnp.exp(logs) * mask_n1t * noise_scale
    return z, m, logs


# ----------------------------------------------------------------------------- main

if __name__ == "__main__":
    B, T = 2, 16
    in_channels, out_channels, hidden = 8, 4, 32
    kernel_size, dilation_rate, n_layers, gin = 5, 1, 4, 16
    noise_scale = 1.0

    key = jax.random.PRNGKey(0)
    kx, kg, kn, kp = jax.random.split(key, 4)
    x = jax.random.normal(kx, (B, T, in_channels), jnp.float32)          # channels-last
    g = jax.random.normal(kg, (B, 1, gin), jnp.float32)                  # (B, 1, gin)
    noise = jax.random.normal(kn, (B, T, out_channels), jnp.float32)     # randn_like(m) surrogate
    lengths = jnp.array([T, 12])
    x_mask = (jnp.arange(T)[None, :] < lengths[:, None]).astype(jnp.float32)[..., None]  # (B,T,1)

    params = init_params(kp, in_channels, out_channels, hidden, kernel_size, n_layers, gin)

    z, m, logs, mask_out = posterior_encoder(
        x, x_mask, g, noise, params, hidden=hidden, kernel_size=kernel_size,
        dilation_rate=dilation_rate, n_layers=n_layers, out_channels=out_channels,
        noise_scale=noise_scale)
    jax.block_until_ready((z, m, logs))

    # verify against an independent pure-JAX reference in PyTorch's NCT layout
    x_nct = jnp.transpose(x, (0, 2, 1))
    mask_n1t = jnp.transpose(x_mask, (0, 2, 1))
    noise_nct = jnp.transpose(noise, (0, 2, 1))
    g_nc1 = jnp.transpose(g, (0, 2, 1))
    z_r, m_r, logs_r = ref_forward(
        x_nct, mask_n1t, g_nc1, noise_nct, params, hidden=hidden,
        kernel_size=kernel_size, dilation_rate=dilation_rate, n_layers=n_layers,
        out_channels=out_channels, noise_scale=noise_scale)

    to_nct = lambda a: jnp.transpose(a, (0, 2, 1))
    for got, want in ((z, z_r), (m, m_r), (logs, logs_r)):
        assert jnp.allclose(to_nct(got), want, atol=5e-2, rtol=5e-2), "mismatch vs reference"

    print("KERNEL_OK")
</pallas_src>

<mosaic_0001>
module attributes {stable_mosaic.version = 11 : i64} {
  func.func @posterior_encoder_kernel(%arg0: i32, %arg1: i32, %arg2: memref<1x16x8xbf16, #tpu.memory_space<vmem>>, %arg3: memref<1x16x1xf32, #tpu.memory_space<vmem>>, %arg4: memref<1x1x1x32xf32, #tpu.memory_space<vmem>>, %arg5: memref<1x1x1x32xf32, #tpu.memory_space<vmem>>, %arg6: memref<8x32xbf16, #tpu.memory_space<vmem>>, %arg7: memref<1x32xf32, #tpu.memory_space<vmem>>, %arg8: memref<1x160x32xbf16, #tpu.memory_space<vmem>>, %arg9: memref<1x160x32xbf16, #tpu.memory_space<vmem>>, %arg10: memref<1x32x32xbf16, #tpu.memory_space<vmem>>, %arg11: memref<1x1x32xf32, #tpu.memory_space<vmem>>, %arg12: memref<1x32x32xbf16, #tpu.memory_space<vmem>>, %arg13: memref<1x1x32xf32, #tpu.memory_space<vmem>>, %arg14: memref<32x8xbf16, #tpu.memory_space<vmem>>, %arg15: memref<1x8xf32, #tpu.memory_space<vmem>>, %arg16: memref<4x5xi32, #tpu.memory_space<smem>>, %arg17: memref<1x16x8xf32, #tpu.memory_space<vmem>>, %arg18: memref<48x32xbf16, #tpu.memory_space<vmem>>, %arg19: memref<16x32xf32, #tpu.memory_space<vmem>>) attributes {dimension_semantics = [#tpu.dimension_semantics<parallel>, #tpu.dimension_semantics<arbitrary>], iteration_bounds = array<i64: 2, 4>, scalar_prefetch = 0 : i64, scratch_operands = 2 : i64, tpu.core_type = #tpu.core_type<tc>, window_params = [{transform_indices = @transform_0, window_bounds = array<i64: 1, 16, 8>}, {transform_indices = @transform_1, window_bounds = array<i64: 1, 16, 1>}, {transform_indices = @transform_2, window_bounds = array<i64: 1, 1, 1, 32>}, {transform_indices = @transform_3, window_bounds = array<i64: 1, 1, 1, 32>}, {pipeline_mode = #tpu.pipeline_mode<synchronous>, transform_indices = @transform_4, window_bounds = array<i64: 8, 32>}, {pipeline_mode = #tpu.pipeline_mode<synchronous>, transform_indices = @transform_5, window_bounds = array<i64: 1, 32>}, {transform_indices = @transform_6, window_bounds = array<i64: 1, 160, 32>}, {transform_indices = @transform_7, window_bounds = array<i64: 1, 160, 32>}, {transform_indices = @transform_8, window_bounds = array<i64: 1, 32, 32>}, {transform_indices = @transform_9, window_bounds = array<i64: 1, 1, 32>}, {transform_indices = @transform_10, window_bounds = array<i64: 1, 32, 32>}, {transform_indices = @transform_11, window_bounds = array<i64: 1, 1, 32>}, {pipeline_mode = #tpu.pipeline_mode<synchronous>, transform_indices = @transform_12, window_bounds = array<i64: 32, 8>}, {pipeline_mode = #tpu.pipeline_mode<synchronous>, transform_indices = @transform_13, window_bounds = array<i64: 1, 8>}, {transform_indices = @transform_14, window_bounds = array<i64: 4, 5>}, {transform_indices = @transform_15, window_bounds = array<i64: 1, 16, 8>}]} {
    %c0 = arith.constant 0 : index
    %c0_0 = arith.constant 0 : index
    %c0_1 = arith.constant 0 : index
    %0 = vector.load %arg3[%c0, %c0_0, %c0_1] : memref<1x16x1xf32, #tpu.memory_space<vmem>>, vector<1x16x1xf32>
    %1 = vector.shape_cast %0 : vector<1x16x1xf32> to vector<16x1xf32>
    %c0_i32 = arith.constant 0 : i32
    %2 = arith.cmpi eq, %arg1, %c0_i32 : i32
    %3 = arith.extui %2 : i1 to i32
    %c0_i32_2 = arith.constant 0 : i32
    %4 = arith.cmpi ne, %3, %c0_i32_2 : i32
    scf.if %4 {
      %cst_38 = arith.constant 0.000000e+00 : bf16
      %49 = vector.broadcast %cst_38 : bf16 to vector<16x32xbf16>
      %c0_39 = arith.constant 0 : index
      %c0_40 = arith.constant 0 : index
      %50 = vector.load %arg18[%c0_39, %c0_40] : memref<48x32xbf16, #tpu.memory_space<vmem>>, vector<16x32xbf16>
      tpu.vector_store %arg18[%c0_39, %c0_40], %49 {strides = array<i32>} : memref<48x32xbf16, #tpu.memory_space<vmem>>, vector<16x32xbf16>,
      %c32 = arith.constant 32 : index
      %c0_41 = arith.constant 0 : index
      %51 = vector.load %arg18[%c32, %c0_41] : memref<48x32xbf16, #tpu.memory_space<vmem>>, vector<16x32xbf16>
      tpu.vector_store %arg18[%c32, %c0_41], %49 {strides = array<i32>} : memref<48x32xbf16, #tpu.memory_space<vmem>>, vector<16x32xbf16>,
      %c0_42 = arith.constant 0 : index
      %c0_43 = arith.constant 0 : index
      %c0_44 = arith.constant 0 : index
      %52 = vector.load %arg2[%c0_42, %c0_43, %c0_44] : memref<1x16x8xbf16, #tpu.memory_space<vmem>>, vector<1x16x8xbf16>
      %53 = vector.shape_cast %52 : vector<1x16x8xbf16> to vector<16x8xbf16>
      %c0_45 = arith.constant 0 : index
      %c0_46 = arith.constant 0 : index
      %54 = vector.load %arg6[%c0_45, %c0_46] : memref<8x32xbf16, #tpu.memory_space<vmem>>, vector<8x32xbf16>
      %cst_47 = arith.constant dense<0.000000e+00> : vector<16x32xf32>
      %55 = tpu.matmul %53, %54, %cst_47 {dimension_numbers = #tpu.dot_dimension_numbers<[1], [0], [0], [1], [0, 0, 1, 1], [], []>} : vector<16x8xbf16>, vector<8x32xbf16>, vector<16x32xf32> -> vector<16x32xf32>
      %c0_48 = arith.constant 0 : index
      %c0_49 = arith.constant 0 : index
      %56 = vector.load %arg7[%c0_48, %c0_49] : memref<1x32xf32, #tpu.memory_space<vmem>>, vector<1x32xf32>
      %57 = vector.broadcast %56 : vector<1x32xf32> to vector<16x32xf32>
      %58 = arith.addf %55, %57 : vector<16x32xf32>
      %59 = vector.broadcast %1 : vector<16x1xf32> to vector<16x32xf32>
      %60 = arith.mulf %58, %59 : vector<16x32xf32>
      %61 = arith.truncf %60 : vector<16x32xf32> to vector<16x32xbf16>
      %c16_50 = arith.constant 16 : index
      %c0_51 = arith.constant 0 : index
      %62 = vector.load %arg18[%c16_50, %c0_51] : memref<48x32xbf16, #tpu.memory_space<vmem>>, vector<16x32xbf16>
      tpu.vector_store %arg18[%c16_50, %c0_51], %61 {strides = array<i32>} : memref<48x32xbf16, #tpu.memory_space<vmem>>, vector<16x32xbf16>,
      %cst_52 = arith.constant 0.000000e+00 : f32
      %63 = vector.broadcast %cst_52 : f32 to vector<16x32xf32>
      %c0_53 = arith.constant 0 : index
      %c0_54 = arith.constant 0 : index
      %64 = vector.load %arg19[%c0_53, %c0_54] : memref<16x32xf32, #tpu.memory_space<vmem>>, vector<16x32xf32>
      tpu.vector_store %arg19[%c0_53, %c0_54], %63 {strides = array<i32>} : memref<16x32xf32, #tpu.memory_space<vmem>>, vector<16x32xf32>,
    } else {
    }
    %c14 = arith.constant 14 : index
    %c0_3 = arith.constant 0 : index
    %5 = vector.load %arg18[%c14, %c0_3] : memref<48x32xbf16, #tpu.memory_space<vmem>>, vector<16x32xbf16>
    %c15 = arith.constant 15 : index
    %c0_4 = arith.constant 0 : index
    %6 = vector.load %arg18[%c15, %c0_4] : memref<48x32xbf16, #tpu.memory_space<vmem>>, vector<16x32xbf16>
    %c16 = arith.constant 16 : index
    %c0_5 = arith.constant 0 : index
    %7 = vector.load %arg18[%c16, %c0_5] : memref<48x32xbf16, #tpu.memory_space<vmem>>, vector<16x32xbf16>
    %c17 = arith.constant 17 : index
    %c0_6 = arith.constant 0 : index
    %8 = vector.load %arg18[%c17, %c0_6] : memref<48x32xbf16, #tpu.memory_space<vmem>>, vector<16x32xbf16>
    %c18 = arith.constant 18 : index
    %c0_7 = arith.constant 0 : index
    %9 = vector.load %arg18[%c18, %c0_7] : memref<48x32xbf16, #tpu.memory_space<vmem>>, vector<16x32xbf16>
    %10 = tpu.concatenate %5, %6, %7, %8, %9 in 1 : vector<16x32xbf16>, vector<16x32xbf16>, vector<16x32xbf16>, vector<16x32xbf16>, vector<16x32xbf16> -> vector<16x160xbf16>
    %c0_8 = arith.constant 0 : index
    %c0_9 = arith.constant 0 : index
    %c0_10 = arith.constant 0 : index
    %11 = vector.load %arg8[%c0_8, %c0_9, %c0_10] : memref<1x160x32xbf16, #tpu.memory_space<vmem>>, vector<1x160x32xbf16>
    %12 = vector.shape_cast %11 : vector<1x160x32xbf16> to vector<160x32xbf16>
    %cst = arith.constant dense<0.000000e+00> : vector<16x32xf32>
    %13 = tpu.matmul %10, %12, %cst {dimension_numbers = #tpu.dot_dimension_numbers<[1], [0], [0], [1], [0, 0, 1, 1], [], []>} : vector<16x160xbf16>, vector<160x32xbf16>, vector<16x32xf32> -> vector<16x32xf32>
    %c0_11 = arith.constant 0 : index
    %c0_12 = arith.constant 0 : index
    %c0_13 = arith.constant 0 : index
    %c0_14 = arith.constant 0 : index
    %14 = vector.load %arg4[%c0_11, %c0_12, %c0_13, %c0_14] : memref<1x1x1x32xf32, #tpu.memory_space<vmem>>, vector<1x1x1x32xf32>
    %15 = vector.shape_cast %14 : vector<1x1x1x32xf32> to vector<1x32xf32>
    %16 = vector.broadcast %15 : vector<1x32xf32> to vector<16x32xf32>
    %17 = arith.addf %13, %16 : vector<16x32xf32>
    %c0_15 = arith.constant 0 : index
    %c0_16 = arith.constant 0 : index
    %c0_17 = arith.constant 0 : index
    %18 = vector.load %arg9[%c0_15, %c0_16, %c0_17] : memref<1x160x32xbf16, #tpu.memory_space<vmem>>, vector<1x160x32xbf16>
    %19 = vector.shape_cast %18 : vector<1x160x32xbf16> to vector<160x32xbf16>
    %cst_18 = arith.constant dense<0.000000e+00> : vector<16x32xf32>
    %20 = tpu.matmul %10, %19, %cst_18 {dimension_numbers = #tpu.dot_dimension_numbers<[1], [0], [0], [1], [0, 0, 1, 1], [], []>} : vector<16x160xbf16>, vector<160x32xbf16>, vector<16x32xf32> -> vector<16x32xf32>
    %c0_19 = arith.constant 0 : index
    %c0_20 = arith.constant 0 : index
    %c0_21 = arith.constant 0 : index
    %c0_22 = arith.constant 0 : index
    %21 = vector.load %arg5[%c0_19, %c0_20, %c0_21, %c0_22] : memref<1x1x1x32xf32, #tpu.memory_space<vmem>>, vector<1x1x1x32xf32>
    %22 = vector.shape_cast %21 : vector<1x1x1x32xf32> to vector<1x32xf32>
    %23 = vector.broadcast %22 : vector<1x32xf32> to vector<16x32xf32>
    %24 = arith.addf %20, %23 : vector<16x32xf32>
    %25 = math.tanh %17 : vector<16x32xf32>
    %26 = arith.negf %24 : vector<16x32xf32>
    %27 = math.exp %26 : vector<16x32xf32>
    %cst_23 = arith.constant 1.000000e+00 : f32
    %28 = vector.broadcast %cst_23 : f32 to vector<16x32xf32>
    %29 = arith.addf %28, %27 : vector<16x32xf32>
    %30 = arith.divf %28, %29 : vector<16x32xf32>
    %31 = arith.mulf %25, %30 : vector<16x32xf32>
    %32 = arith.truncf %31 : vector<16x32xf32> to vector<16x32xbf16>
    %c0_24 = arith.constant 0 : index
    %c0_25 = arith.constant 0 : index
    %33 = vector.load %arg19[%c0_24, %c0_25] : memref<16x32xf32, #tpu.memory_space<vmem>>, vector<16x32xf32>
    %c0_26 = arith.constant 0 : index
    %c0_27 = arith.constant 0 : index
    %c0_28 = arith.constant 0 : index
    %34 = vector.load %arg12[%c0_26, %c0_27, %c0_28] : memref<1x32x32xbf16, #tpu.memory_space<vmem>>, vector<1x32x32xbf16>
    %35 = vector.shape_cast %34 : vector<1x32x32xbf16> to vector<32x32xbf16>
    %cst_29 = arith.constant dense<0.000000e+00> : vector<16x32xf32>
    %36 = tpu.matmul %32, %35, %cst_29 {dimension_numbers = #tpu.dot_dimension_numbers<[1], [0], [0], [1], [0, 0, 1, 1], [], []>} : vector<16x32xbf16>, vector<32x32xbf16>, vector<16x32xf32> -> vector<16x32xf32>
    %c0_30 = arith.constant 0 : index
    %c0_31 = arith.constant 0 : index
    %c0_32 = arith.constant 0 : index
    %37 = vector.load %arg13[%c0_30, %c0_31, %c0_32] : memref<1x1x32xf32, #tpu.memory_space<vmem>>, vector<1x1x32xf32>
    %38 = vector.shape_cast %37 : vector<1x1x32xf32> to vector<1x32xf32>
    %39 = vector.broadcast %38 : vector<1x32xf32> to vector<16x32xf32>
    %40 = arith.addf %36, %39 : vector<16x32xf32>
    %41 = arith.addf %33, %40 : vector<16x32xf32>
    %c0_33 = arith.constant 0 : index
    %c0_34 = arith.constant 0 : index
    %42 = vector.load %arg19[%c0_33, %c0_34] : memref<16x32xf32, #tpu.memory_space<vmem>>, vector<16x32xf32>
    tpu.vector_store %arg19[%c0_33, %c0_34], %41 {strides = array<i32>} : memref<16x32xf32, #tpu.memory_space<vmem>>, vector<16x32xf32>,
    %c3_i32 = arith.constant 3 : i32
    %43 = arith.cmpi slt, %arg1, %c3_i32 : i32
    %44 = arith.extui %43 : i1 to i32
    %c0_i32_35 = arith.constant 0 : i32
    %45 = arith.cmpi ne, %44, %c0_i32_35 : i32
    scf.if %45 {
      %c0_38 = arith.constant 0 : index
      %c0_39 = arith.constant 0 : index
      %c0_40 = arith.constant 0 : index
      %49 = vector.load %arg10[%c0_38, %c0_39, %c0_40] : memref<1x32x32xbf16, #tpu.memory_space<vmem>>, vector<1x32x32xbf16>
      %50 = vector.shape_cast %49 : vector<1x32x32xbf16> to vector<32x32xbf16>
      %cst_41 = arith.constant dense<0.000000e+00> : vector<16x32xf32>
      %51 = tpu.matmul %32, %50, %cst_41 {dimension_numbers = #tpu.dot_dimension_numbers<[1], [0], [0], [1], [0, 0, 1, 1], [], []>} : vector<16x32xbf16>, vector<32x32xbf16>, vector<16x32xf32> -> vector<16x32xf32>
      %c0_42 = arith.constant 0 : index
      %c0_43 = arith.constant 0 : index
      %c0_44 = arith.constant 0 : index
      %52 = vector.load %arg11[%c0_42, %c0_43, %c0_44] : memref<1x1x32xf32, #tpu.memory_space<vmem>>, vector<1x1x32xf32>
      %53 = vector.shape_cast %52 : vector<1x1x32xf32> to vector<1x32xf32>
      %54 = vector.broadcast %53 : vector<1x32xf32> to vector<16x32xf32>
      %55 = arith.addf %51, %54 : vector<16x32xf32>
      %c16_45 = arith.constant 16 : index
      %c0_46 = arith.constant 0 : index
      %56 = vector.load %arg18[%c16_45, %c0_46] : memref<48x32xbf16, #tpu.memory_space<vmem>>, vector<16x32xbf16>
      %57 = arith.extf %56 : vector<16x32xbf16> to vector<16x32xf32>
      %58 = arith.addf %57, %55 : vector<16x32xf32>
      %59 = vector.broadcast %1 : vector<16x1xf32> to vector<16x32xf32>
      %60 = arith.mulf %58, %59 : vector<16x32xf32>
      %61 = arith.truncf %60 : vector<16x32xf32> to vector<16x32xbf16>
      %c16_47 = arith.constant 16 : index
      %c0_48 = arith.constant 0 : index
      %62 = vector.load %arg18[%c16_47, %c0_48] : memref<48x32xbf16, #tpu.memory_space<vmem>>, vector<16x32xbf16>
      tpu.vector_store %arg18[%c16_47, %c0_48], %61 {strides = array<i32>} : memref<48x32xbf16, #tpu.memory_space<vmem>>, vector<16x32xbf16>,
    } else {
    }
    %c3_i32_36 = arith.constant 3 : i32
    %46 = arith.cmpi eq, %arg1, %c3_i32_36 : i32
    %47 = arith.extui %46 : i1 to i32
    %c0_i32_37 = arith.constant 0 : i32
    %48 = arith.cmpi ne, %47, %c0_i32_37 : i32
    scf.if %48 {
      %c0_38 = arith.constant 0 : index
      %c0_39 = arith.constant 0 : index
      %49 = vector.load %arg19[%c0_38, %c0_39] : memref<16x32xf32, #tpu.memory_space<vmem>>, vector<16x32xf32>
      %50 = vector.broadcast %1 : vector<16x1xf32> to vector<16x32xf32>
      %51 = arith.mulf %49, %50 : vector<16x32xf32>
      %52 = arith.truncf %51 : vector<16x32xf32> to vector<16x32xbf16>
      %c0_40 = arith.constant 0 : index
      %c0_41 = arith.constant 0 : index
      %53 = vector.load %arg14[%c0_40, %c0_41] : memref<32x8xbf16, #tpu.memory_space<vmem>>, vector<32x8xbf16>
      %cst_42 = arith.constant dense<0.000000e+00> : vector<16x8xf32>
      %54 = tpu.matmul %52, %53, %cst_42 {dimension_numbers = #tpu.dot_dimension_numbers<[1], [0], [0], [1], [0, 0, 1, 1], [], []>} : vector<16x32xbf16>, vector<32x8xbf16>, vector<16x8xf32> -> vector<16x8xf32>
      %c0_43 = arith.constant 0 : index
      %c0_44 = arith.constant 0 : index
      %55 = vector.load %arg15[%c0_43, %c0_44] : memref<1x8xf32, #tpu.memory_space<vmem>>, vector<1x8xf32>
      %56 = vector.broadcast %55 : vector<1x8xf32> to vector<16x8xf32>
      %57 = arith.addf %54, %56 : vector<16x8xf32>
      %58 = vector.broadcast %1 : vector<16x1xf32> to vector<16x8xf32>
      %59 = arith.mulf %57, %58 : vector<16x8xf32>
      %c0_45 = arith.constant 0 : index
      %c0_46 = arith.constant 0 : index
      %c0_47 = arith.constant 0 : index
      %60 = vector.load %arg17[%c0_45, %c0_46, %c0_47] : memref<1x16x8xf32, #tpu.memory_space<vmem>>, vector<1x16x8xf32>
      %61 = vector.shape_cast %60 : vector<1x16x8xf32> to vector<16x8xf32>
      %62 = vector.shape_cast %59 : vector<16x8xf32> to vector<1x16x8xf32>
      tpu.vector_store %arg17[%c0_45, %c0_46, %c0_47], %62 {strides = array<i32>} : memref<1x16x8xf32, #tpu.memory_space<vmem>>, vector<1x16x8xf32>,
    } else {
    }
    return
  }
  func.func @transform_0(%arg0: i32, %arg1: i32) -> (i32, i32, i32) {
    %c0_i32 = arith.constant 0 : i32
    %c0_i32_0 = arith.constant 0 : i32
    %c0_i32_1 = arith.constant 0 : i32
    return %arg0, %c0_i32, %c0_i32_0 : i32, i32, i32
  }
  func.func @transform_1(%arg0: i32, %arg1: i32) -> (i32, i32, i32) {
    %c0_i32 = arith.constant 0 : i32
    %c0_i32_0 = arith.constant 0 : i32
    %c0_i32_1 = arith.constant 0 : i32
    return %arg0, %c0_i32, %c0_i32_0 : i32, i32, i32
  }
  func.func @transform_2(%arg0: i32, %arg1: i32) -> (i32, i32, i32, i32) {
    %c0_i32 = arith.constant 0 : i32
    %c0_i32_0 = arith.constant 0 : i32
    %c0_i32_1 = arith.constant 0 : i32
    return %arg0, %arg1, %c0_i32, %c0_i32_0 : i32, i32, i32, i32
  }
  func.func @transform_3(%arg0: i32, %arg1: i32) -> (i32, i32, i32, i32) {
    %c0_i32 = arith.constant 0 : i32
    %c0_i32_0 = arith.constant 0 : i32
    %c0_i32_1 = arith.constant 0 : i32
    return %arg0, %arg1, %c0_i32, %c0_i32_0 : i32, i32, i32, i32
  }
  func.func @transform_4(%arg0: i32, %arg1: i32) -> (i32, i32) {
    %c0_i32 = arith.constant 0 : i32
    %c0_i32_0 = arith.constant 0 : i32
    %c0_i32_1 = arith.constant 0 : i32
    return %c0_i32, %c0_i32_0 : i32, i32
  }
  func.func @transform_5(%arg0: i32, %arg1: i32) -> (i32, i32) {
    %c0_i32 = arith.constant 0 : i32
    %c0_i32_0 = arith.constant 0 : i32
    %c0_i32_1 = arith.constant 0 : i32
    return %c0_i32, %c0_i32_0 : i32, i32
  }
  func.func @transform_6(%arg0: i32, %arg1: i32) -> (i32, i32, i32) {
    %c0_i32 = arith.constant 0 : i32
    %c0_i32_0 = arith.constant 0 : i32
    %c0_i32_1 = arith.constant 0 : i32
    return %arg1, %c0_i32, %c0_i32_0 : i32, i32, i32
  }
  func.func @transform_7(%arg0: i32, %arg1: i32) -> (i32, i32, i32) {
    %c0_i32 = arith.constant 0 : i32
    %c0_i32_0 = arith.constant 0 : i32
    %c0_i32_1 = arith.constant 0 : i32
    return %arg1, %c0_i32, %c0_i32_0 : i32, i32, i32
  }
  func.func @transform_8(%arg0: i32, %arg1: i32) -> (i32, i32, i32) {
    %c0_i32 = arith.constant 0 : i32
    %c0_i32_0 = arith.constant 0 : i32
    %c0_i32_1 = arith.constant 0 : i32
    return %arg1, %c0_i32, %c0_i32_0 : i32, i32, i32
  }
  func.func @transform_9(%arg0: i32, %arg1: i32) -> (i32, i32, i32) {
    %c0_i32 = arith.constant 0 : i32
    %c0_i32_0 = arith.constant 0 : i32
    %c0_i32_1 = arith.constant 0 : i32
    return %arg1, %c0_i32, %c0_i32_0 : i32, i32, i32
  }
  func.func @transform_10(%arg0: i32, %arg1: i32) -> (i32, i32, i32) {
    %c0_i32 = arith.constant 0 : i32
    %c0_i32_0 = arith.constant 0 : i32
    %c0_i32_1 = arith.constant 0 : i32
    return %arg1, %c0_i32, %c0_i32_0 : i32, i32, i32
  }
  func.func @transform_11(%arg0: i32, %arg1: i32) -> (i32, i32, i32) {
    %c0_i32 = arith.constant 0 : i32
    %c0_i32_0 = arith.constant 0 : i32
    %c0_i32_1 = arith.constant 0 : i32
    return %arg1, %c0_i32, %c0_i32_0 : i32, i32, i32
  }
  func.func @transform_12(%arg0: i32, %arg1: i32) -> (i32, i32) {
    %c0_i32 = arith.constant 0 : i32
    %c0_i32_0 = arith.constant 0 : i32
    %c0_i32_1 = arith.constant 0 : i32
    return %c0_i32, %c0_i32_0 : i32, i32
  }
  func.func @transform_13(%arg0: i32, %arg1: i32) -> (i32, i32) {
    %c0_i32 = arith.constant 0 : i32
    %c0_i32_0 = arith.constant 0 : i32
    %c0_i32_1 = arith.constant 0 : i32
    return %c0_i32, %c0_i32_0 : i32, i32
  }
  func.func @transform_14(%arg0: i32, %arg1: i32) -> (i32, i32) {
    %c0_i32 = arith.constant 0 : i32
    %c0_i32_0 = arith.constant 0 : i32
    %c0_i32_1 = arith.constant 0 : i32
    return %c0_i32, %c0_i32_0 : i32, i32
  }
  func.func @transform_15(%arg0: i32, %arg1: i32) -> (i32, i32, i32) {
    %c0_i32 = arith.constant 0 : i32
    %c0_i32_0 = arith.constant 0 : i32
    %c0_i32_1 = arith.constant 0 : i32
    return %arg0, %c0_i32, %c0_i32_0 : i32, i32, i32
  }
}

</mosaic_0001>

<bundles_post_ra>
// kernel: tpu_custom_call.1
= control target key start
LH: loop header
LB: loop body
LE: loop exit
PB: predicated region body
PF: predicated region fallthrough
CT: control target
= control target key end

     0   :  { %s2103_s0 = inlined_call_operand.vmem [shape: bf16[2,16,8], index: 0, kind: input, shape index: {}]   ;;  %s2104_s1 = inlined_call_operand.vmem [shape: f32[2,16,1], index: 1, kind: input, shape index: {}]   ;;  %s2105_s2 = inlined_call_operand.vmem [shape: f32[2,4,1,32], index: 2, kind: input, shape index: {}]   ;;  %s2106_s3 = inlined_call_operand.vmem [shape: f32[2,4,1,32], index: 3, kind: input, shape index: {}]   ;;  %s2107_s4 = inlined_call_operand.vmem [shape: bf16[8,32], index: 4, kind: input, shape index: {}]   ;;  %s2108_s5 = inlined_call_operand.vmem [shape: f32[1,32], index: 5, kind: input, shape index: {}]   ;;  %s2109_s6 = inlined_call_operand.vmem [shape: bf16[4,160,32], index: 6, kind: input, shape index: {}]   ;;  %s2110_s7 = inlined_call_operand.vmem [shape: bf16[4,160,32], index: 7, kind: input, shape index: {}]   ;;  %s2111_s8 = inlined_call_operand.vmem [shape: bf16[4,32,32], index: 8, kind: input, shape index: {}]   ;;  %s2112_s9 = inlined_call_operand.vmem [shape: f32[4,1,32], index: 9, kind: input, shape index: {}]   ;;  %s2113_s10 = inlined_call_operand.vmem [shape: bf16[4,32,32], index: 10, kind: input, shape index: {}]   ;;  %s2114_s11 = inlined_call_operand.vmem [shape: f32[4,1,32], index: 11, kind: input, shape index: {}]   ;;  %s2115_s12 = inlined_call_operand.vmem [shape: bf16[32,8], index: 12, kind: input, shape index: {}]   ;;  %s2116_s13 = inlined_call_operand.vmem [shape: f32[1,8], index: 13, kind: input, shape index: {}]   ;;  %s2117_s14 = inlined_call_operand.vmem [shape: s32[4,5], index: 14, kind: input, shape index: {}]   ;;  %s2118_s15 = inlined_call_operand.vmem [shape: f32[2,16,8], index: 15, kind: output, shape index: {}]  }
   0x1   :  { %2123 = sst [smem:[#allocation12_spill]] %s2103_s0 }
   0x2   :  { %2124 = sst [smem:[#allocation13_spill]] %s2104_s1 }
   0x3   :  { %2125 = sst [smem:[#allocation14_spill]] %s2107_s4 }
   0x4   :  { %2126 = sst [smem:[#allocation15_spill]] %s2108_s5 }
   0x5   :  { %2127 = sst [smem:[#allocation16_spill]] %s2109_s6 }
   0x6   :  { %2128 = sst [smem:[#allocation17_spill]] %s2115_s12 }
   0x7   :  { %2129 = sst [smem:[#allocation18_spill]] %s2116_s13 }
   0x8   :  { %2130 = sst [smem:[#allocation19_spill]] %s2117_s14 }
   0x9   :  { %20 = vsyncpa [#allocation5], 0  ;;  %s1902_s18 = smov 0   ;;  %s1904_s19 = smov 0  }
   0xa   :  { %s1906_s20 = smov 0   ;;  %s1908_s21 = smov 0  }
   0xb   :  { %s1910_s22 = smov 0  }
   0xc LB: > { %2131 = sst [smem:[#allocation7_spill]] %s1804_s20  ;;  %s1486_s23 = sadd.s32 4294967295, %s1812_s22   ;;  %s1812_s22 = sphi %s1910_s22, %s26_s22   ;;  %s1808_s21 = sphi %s1908_s21, %s2150_s21   ;;  %s1804_s20 = sphi %s1906_s20, %s2149_s20   ;;  %s1800_s19 = sphi %s1904_s19, %s2148_s19   ;;  %s1796_s18 = sphi %s1902_s18, %s2147_s18  }
   0xd   : > { %2132 = sst [smem:[#allocation8_spill]] %s1808_s21  ;;  %s35_s24 = sadd.s32 1, %s1804_s20 }
   0xe   : > { %2133 = sst [smem:[#allocation9_spill]] %s1812_s22  ;;  %p36_p0 = scmp.ge.s32.totalorder %s35_s24, 4 }
   0xf   : > { %s38_s25 = sadd.s32 1, %s1808_s21  ;;  %p1488_p1 = scmp.ge.s32.totalorder %s1812_s22, 1 }
  0x10   : > { %p438_p2 = scmp.lt.s32.totalorder %s1812_s22, 9  ;;  %s2152_s24 = smov (%p36_p0, %s35_s24), 0 }
  0x11   : > { %2134 = sst [smem:[#allocation10_spill]] %s2152_s24  ;;  %s2154_s25 = smov (!%p36_p0, %s38_s25), %s1808_s21 }
  0x12   : > { %p439_p3 = pnand %p1488_p1, %p438_p2  ;;  %p40_p4 = scmp.ge.s32.totalorder %s2154_s25, 2 }
  0x13   : > { %p1684_p5 = scmp.eq.s32.totalorder %s1486_s23, 0  ;;  %s2135_s14 = sld [smem:[#allocation19_spill]] }
  0x14   : > { %p1680_p6 = pneg %p439_p3  ;;  %s2156_s25 = smov (%p40_p4, %s2154_s25), 0 }
  0x15   : > { %2136 = sst [smem:[#allocation11_spill]] %s2156_s25  ;;  %s1814_s29 = smov [#allocation4]  }
  0x16   : > { %p1681_p7 = pnand %p1684_p5, %p1680_p6  ;;  %555 = sbr.rel (%p439_p3) target bundleno = 1079 (0x437), region = 80 }
  0x19   : > { %s462_s28 = sshll.u32 %s2135_s14, 4  ;;  %s463_s28 = int_to_ptr.vmem [resolvable:$true] %s462_s28 }
  0x1a   : > { %1683 = dma.vmem_to_smem (!%p1681_p7), %s463_s28, 64, %s1814_s29, [#allocation5]  }
  0x1b   : > { %1791 = dma.done.wait (%p1684_p5), [#allocation5], 64  }
  0x1c   : > { %1793 = vsyncadd (%p1684_p5), [#allocation5], 4294967232 }
  0x1d   : > { %562 = sfence }
  0x1e   : > { %p650_p8 = scmp.lt.s32.totalorder %s1800_s19, 1  ;;  %p662_p9 = scmp.lt.s32.totalorder %s1796_s18, 3 }
  0x1f   : > { %s2137_s0 = sld [smem:[#allocation12_spill]]  ;;  %p1507_p10 = scmp.ne.s32.totalorder %s1796_s18, 0 }
  0x20   : > { %s2158_s19 = smov (!%p650_p8, %s1800_s19), 1  ;;  %s2138_s1 = sld [smem:[#allocation13_spill]] }
  0x21   : > { %s1940_s30 = scalar_select %p662_p9, %s1796_s18, 3 }
  0x22   : > { %s1628_s16 = sshll.u32 %s2158_s19, 3  ;;  %s1629_s17 = sshll.u32 %s2158_s19, 4 }
  0x23   : > { %s1497_s25 = sshll.u32 %s2158_s19, 2  ;;  %s1675_s24 = smul.u32 80, %s1940_s30 }
  0x24   : > { %s1954_s21 = sadd.s32 %s1497_s25, %s1940_s30  ;;  %s1630_s20 = sshll.u32 %s1940_s30, 4 }
  0x25   : > { %s654_s27 = scalar_lea.vmem %s2137_s0, %s1628_s16  ;;  %s2139_s6 = sld [smem:[#allocation16_spill]] }
  0x26   : > { %s659_s14 = scalar_lea.vmem %s2138_s1, %s1629_s17  ;;  %s1973_s25 = scalar_lea.vmem %s2110_s7, %s1675_s24 }
  0x27   : > { %v1949_v0 = vld [vmem:[%s659_s14] sm:$0xff]  ;;  %v1951_v1 = vld [vmem:[%s659_s14 + $0x8] sm:$0xff]  ;;  %s1978_s4 = scalar_lea.vmem %s2111_s8, %s1630_s20  ;;  %s691_s16 = scalar_lea.vmem %s2112_s9, %s1940_s30 }
  0x28   : > { %s1987_s29 = scalar_lea.vmem %s2113_s10, %s1630_s20  ;;  %s699_s1 = scalar_lea.vmem %s2114_s11, %s1940_s30 }
  0x29   : > { %711 = sbr.rel (%p1507_p10) target bundleno = 193 (0xc1), region = 88  ;;  %s2140_s13 = sld [smem:[#allocation14_spill]] (!%p1507_p10) }
  0x2b   : > { %s1968_s0 = scalar_lea.vmem %s2139_s6, %s1675_s24  ;;  %s1996_s6 = scalar_lea.vmem %s2118_s15, %s1629_s17 }
  0x2e   : > { %vm733_vm0 = vcmask 1043456   ;;  %v1633_v4 = vld [vmem:[%s654_s27] sm:$0xff]  ;;  %v1815_v5 = vmov 0   ;;  %vm712_vm1 = vcmask 257024   ;;  %vm729_vm2 = vcmask 64512   ;;  %s2141_s27 = sld [smem:[#allocation15_spill]] }
  0x2f   : > { %v719_v2 = vld [vmem:[%s2140_s13] sm:$0xf]  ;;  %1734 = vset.pattern.permute.xlu0 %v1815_v5  ;;  %714 = vst.msk [vmem:[#allocation2 + $0x4] sm:$0xf] %vm712_vm1, %v1815_v5  ;;  %vm767_vm3 = vcmask 261120   ;;  %v1816_v6 = vmov 0.0  }
  0x30   : > { %v735_v3 = vsel %vm733_vm0, %v719_v2, 0  ;;  %753 = vperm.xlu0 %1734, %v1949_v0   ;;  %715 = vst.msk [vmem:[#allocation2 + $0x10] sm:$0xf] %vm712_vm1, %v1815_v5 }
  0x31   : > { %744 = vmatpush.bf16.msra.mxu0 %v735_v3  ;;  %768 = vst.msk [vmem:[#allocation3] sm:$0xff] %vm767_vm3, %v1816_v6 }
  0x32   : > { %769 = vst.msk [vmem:[#allocation3 + $0x8] sm:$0xff] %vm767_vm3, %v1816_v6 }
  0x34   : > { %1512 = vmatmul.msk.bf16.vlgmr.msra.gmra.mxu0 %vm729_vm2, %v1633_v4  ;;  %v1735_v7 = vld [vmem:[%s2141_s27] ss:$0 sm:$0xff] }
  0x38   : > { %758 = vperm.xlu0 %1734, %v1951_v1  }
  0xa2   : > { %v754_v8 = vpop.permute.xlu0 %753 }
  0xaa   : > { %v759_v15 = vpop.permute.xlu0 %758 }
  0xb1   : > { %v746_v9 = vpop.f32.mrf.mxu0 }
  0xb2   : > { %v747_v10 = vadd.f32 %v1735_v7, %v746_v9 }
  0xb4   : > { %v761_v11 = vmul.f32 %v754_v8, %v747_v10 }
  0xb6   : > { %v763_v12 = vpack.c.bf16 %v761_v11, %v761_v11 }
  0xb8   : > { %765 = vst.msk [vmem:[#allocation2 + $0x8] sm:$0xf] %vm712_vm1, %v763_v12 }
  0xb9   : > { %v748_v13 = vpop.f32.mrf.mxu0 }
  0xba   : > { %v749_v14 = vadd.f32 %v1735_v7, %v748_v13 }
  0xbc   : > { %v762_v16 = vmul.f32 %v759_v15, %v749_v14 }
  0xbe   : > { %v764_v17 = vpack.c.bf16 %v762_v16, %v762_v16 }
  0xc0   : > { %766 = vst.msk [vmem:[#allocation2 + $0xc] sm:$0xf] %vm712_vm1, %v764_v17 }
  0xc1 PF: > { %v1672_v19 = vld [vmem:[#allocation2 + $0x4] sm:$0x8]  ;;  %v1674_v20 = vld [vmem:[#allocation2 + $0x4] sm:$0xf0]   ;;  %v1641_v24 = vld [vmem:[%s1968_s0 + $0x38] sm:$0xff]  ;;  %s1817_s23 = smov 64   ;;  %s2142_s26 = scalar_lea.vmem %s2106_s3, %s1954_s21 }
  0xc2   : > { %v2011_v23 = vor.u32 %v1674_v20, %v1672_v19  ;;  %v774_v27 = vld [vmem:[#allocation2 + $0x10] sm:$0x1]  ;;  %951 = vmatpush.bf16.msra.mxu0 %v1641_v24  ;;  %v1651_v32 = vld [vmem:[%s1973_s25 + $0x38] sm:$0xff]  ;;  %vm787_vm4 = vsmask.f32 7424  ;;  %v1639_v44 = vld [vmem:[%s1968_s0 + $0x28] sm:$0xff] }
  0xc3   : > { %v812_v31 = vunpack.c.l.b16 %v774_v27  ;;  %v1640_v33 = vld [vmem:[%s1968_s0 + $0x30] sm:$0xff]  ;;  %1063 = vmatpush.bf16.msra.mxu2 %v1651_v32  ;;  %vm814_vm5 = vsmask.f32 2304  ;;  %v1649_v47 = vld [vmem:[%s1973_s25 + $0x28] sm:$0xff]  ;;  %s1818_s28 = smov 32   ;;  %s1819_s22 = smov 96  }
  0xc4   : > { %v789_v29 = vshrl.u32 %v2011_v23, 16  ;;  %v791_v30 = vshll.u32 %v2011_v23, 16  ;;  %v1650_v39 = vld [vmem:[%s1973_s25 + $0x30] sm:$0xff]  ;;  %v1638_v51 = vld [vmem:[%s1968_s0 + $0x20] sm:$0xff]  ;;  %v1637_v53 = vld [vmem:[%s1968_s0 + $0x18] sm:$0xff]  ;;  %vm835_vm6 = vcmask 1041408  }
  0xc5   : > { %v813_v38 = vpack.c.b16 %v812_v31, %v812_v31  ;;  %v1648_v52 = vld [vmem:[%s1973_s25 + $0x20] sm:$0xff]  ;;  %v1647_v54 = vld [vmem:[%s1973_s25 + $0x18] sm:$0xff]  ;;  %v775_v55 = vld [vmem:[#allocation2 + $0x8] sm:$0xe]  ;;  %vm880_vm7 = vcmask 1044480   ;;  %vm839_vm8 = vcmask 261120  }
  0xc6   : > { %v793_v36 = vrot.slane %v791_v30, 1  ;;  %952 = vmatpush.bf16.msra.mxu0 %v1640_v33  ;;  %v833_v56 = vunpack.c.l.b16 %v775_v55  ;;  %v1653_v57 = vld [vmem:[%s1973_s25 + $0x48] sm:$0xff]  ;;  %v1636_v60 = vld [vmem:[%s1968_s0 + $0x10] sm:$0xff]  ;;  %v1652_v63 = vld [vmem:[%s1973_s25 + $0x40] sm:$0xff]  ;;  %vm845_vm9 = vcmask 523264   ;;  %vm849_vm10 = vcmask 785408  }
  0xc7   : > { %v1668_v18 = vld [vmem:[#allocation2 + $0x8] sm:$0xff]   ;;  %v824_v43 = vshll.u32 %v813_v38, 16  ;;  %1064 = vmatpush.bf16.msra.mxu2 %v1650_v39  ;;  %v837_v58 = vrot.slane %v813_v38, 6  ;;  %1083 = vmatpush.bf16.msra.mxu3 %v1653_v57  ;;  %v1646_v61 = vld [vmem:[%s1973_s25 + $0x10] sm:$0xff]  ;;  %v1634_v9 = vld [vmem:[%s1968_s0] sm:$0xff]  ;;  %p1606_p11 = scmp.ge.s32.totalorder %s1796_s18, 3 }
  0xc8   : > { %v808_v21 = vrot.slane %v1668_v18, 5  ;;  %v1663_v22 = vunpack.c.h.b16 %v1668_v18  ;;  %v816_v25 = vshrl.u32 %v1668_v18, 16  ;;  %v819_v26 = vshll.u32 %v1668_v18, 16  ;;  %v1635_v2 = vld [vmem:[%s1968_s0 + $0x8] sm:$0xff]  ;;  %v1644_v10 = vld [vmem:[%s1973_s25] sm:$0xff] }
  0xc9   : > { %v794_v40 = vor.u32 %v793_v36, %v789_v29  ;;  %v826_v46 = vrot.slane %v824_v43, 6  ;;  %v1645_v3 = vld [vmem:[%s1973_s25 + $0x8] sm:$0xff]  ;;  %v1642_v11 = vld [vmem:[%s1968_s0 + $0x40] sm:$0xff] }
  0xca   : > { %809 = vrot.lane.b32.xlu1 %v808_v21, %s1817_s23  ;;  %v786_v28 = vpack.c.b16 %v1663_v22, %v1663_v22  ;;  %v818_v34 = vrot.slane %v816_v25, 5  ;;  %v821_v35 = vrot.slane %v819_v26, 6  ;;  %953 = vmatpush.bf16.msra.mxu0 %v1639_v44  ;;  %v834_v59 = vpack.c.b16 %v1663_v22, %v833_v56  ;;  %v1643_v8 = vld [vmem:[%s1968_s0 + $0x48] sm:$0xff] }
  0xcb   : > { %1065 = vmatpush.bf16.msra.mxu2 %v1649_v47  ;;  %1084 = vmatpush.bf16.msra.mxu3 %v1652_v63  ;;  %v772_v13 = vld [vmem:[#allocation2 + $0xc] sm:$0x7] }
  0xcc   : > { %v796_v37 = vshll.u32 %v786_v28, 16  ;;  %v822_v42 = vor.u32 %v821_v35, %v818_v34  ;;  %v800_v48 = vshrl.u32 %v786_v28, 16  ;;  %v836_v62 = vrot.slane %v834_v59, 6  ;;  %971 = vmatpush.bf16.msra.mxu1 %v1643_v8  ;;  %v1655_v33 = vld [vmem:[%s1987_s29 + $0x8] sm:$0xff]  ;;  %v1654_v35 = vld [vmem:[%s1987_s29] sm:$0xff]  ;;  %s2143_s29 = scalar_lea.vmem %s2105_s2, %s1954_s21 }
  0xcd   : > { %v781_v15 = vunpack.c.l.b16 %v772_v13  ;;  %v1736_v47 = vld [vmem:[%s2143_s29] ss:$0 sm:$0xff] }
  0xce   : > { %v798_v41 = vrot.slane %v796_v37, 1  ;;  %v827_v49 = vsel %vm814_vm5, %v822_v42, %v826_v46  ;;  %954 = vmatpush.bf16.msra.mxu0 %v1638_v51  ;;  %v838_v4 = vsel %vm835_vm6, %v836_v62, %v837_v58  ;;  %v884_v5 = vrot.slane %v836_v62, 3 }
  0xcf   : > { %830 = vrot.lane.b32.xlu2 %v827_v49, %s1819_s22  ;;  %1066 = vmatpush.bf16.msra.mxu2 %v1648_v52  ;;  %v885_v6 = vrot.slane %v838_v4, 3  ;;  %v783_v17 = vpack.c.b16 %v781_v15, %v781_v15 }
  0xd0   : > { %v799_v45 = vsel %vm787_vm4, %v794_v40, %v798_v41  ;;  %v802_v50 = vor.u32 %v800_v48, %v798_v41  ;;  %972 = vmatpush.bf16.msra.mxu1 %v1642_v11 }
  0xd1   : > { %803 = vrot.lane.b32.xlu0 %v799_v45, %s1818_s28  ;;  %v886_v7 = vsel %vm880_vm7, %v884_v5, %v885_v6 }
  0xd2   : > { %828 = vrot.lane.b32.xlu1 %v822_v42, %s1819_s22  ;;  %955 = vmatpush.bf16.msra.mxu0 %v1637_v53 }
  0xd3   : > { %1067 = vmatpush.bf16.msra.mxu2 %v1647_v54  ;;  %1594 = vmatmul.msk.bf16.vlgmr.msra.gmra.mxu3 %vm839_vm8, %v886_v7 }
  0xd4   : > { %1553 = vmatmul.msk.bf16.vlgmr.msra.gmra.mxu1 %vm839_vm8, %v886_v7 }
  0xd5   : > { %1165 = vmatpush.bf16.msrb.mxu1 %v1655_v33 }
  0xd6   : > { %956 = vmatpush.bf16.msra.mxu0 %v1636_v60 }
  0xd7   : > { %1068 = vmatpush.bf16.msra.mxu2 %v1646_v61 }
  0xd9   : > { %805 = vrot.lane.b32.xlu0 %v802_v50, %s1818_s28  ;;  %1166 = vmatpush.bf16.msrb.mxu1 %v1654_v35 }
  0xda   : > { %957 = vmatpush.bf16.msra.mxu0 %v1635_v2 }
  0xdb   : > { %1069 = vmatpush.bf16.msra.mxu2 %v1645_v3 }
  0xde   : > { %958 = vmatpush.bf16.msra.mxu0 %v1634_v9 }
  0xdf   : > { %1070 = vmatpush.bf16.msra.mxu2 %v1644_v10 }
 0x129   : > { %v831_v21 = vpop.permute.xlu2 %830 }
 0x13c   : > { %v810_v12 = vpop.permute.xlu1 %809 }
 0x143   : > { %v804_v14 = vpop.permute.xlu0 %803 }
 0x144   : > { %v841_v16 = vsel %vm839_vm8, %v2011_v23, %v804_v14  ;;  %v829_v18 = vpop.permute.xlu1 %828  ;;  %v1737_v23 = vld [vmem:[%s2142_s26] ss:$0 sm:$0xff] }
 0x145   : > { %v847_v19 = vsel %vm845_vm9, %v841_v16, %v810_v12 }
 0x146   : > { %v851_v22 = vsel %vm849_vm10, %v847_v19, %v829_v18  ;;  %v1738_v18 = vld [vmem:[%s699_s1] ss:$0 sm:$0xff]  ;;  %v1134_v19 = vld [vmem:[#allocation3] sm:$0xff] }
 0x147   : > { %v881_v27 = vrot.slane %v851_v22, 3 }
 0x14b   : > { %v806_v20 = vpop.permute.xlu0 %805 }
 0x14c   : > { %v844_v24 = vsel %vm839_vm8, %v783_v17, %v806_v20 }
 0x14d   : > { %v848_v25 = vsel %vm845_vm9, %v844_v24, %v810_v12  ;;  %v1135_v24 = vld [vmem:[#allocation3 + $0x8] sm:$0xff] }
 0x14e   : > { %v853_v26 = vsel %vm849_vm10, %v848_v25, %v831_v21 }
 0x14f   : > { %v882_v28 = vrot.slane %v853_v26, 3 }
 0x151   : > { %v883_v29 = vsel %vm880_vm7, %v881_v27, %v882_v28  ;;  %v974_v45 = vpop.f32.mrf.mxu1 }
 0x152   : > { %959 = vmatmul.bf16.vlgmr.msra.gmra.mxu0 %v883_v29  ;;  %1071 = vmatmul.bf16.vlgmr.msra.gmra.mxu2 %v883_v29 }
 0x156   : > { %v1086_v30 = vpop.f32.mrf.mxu3 }
 0x159   : > { %v976_v55 = vpop.f32.mrf.mxu1 }
 0x15e   : > { %v1088_v39 = vpop.f32.mrf.mxu3 }
 0x1cf   : > { %v960_v42 = vpop.f32.mrf.mxu0 }
 0x1d0   : > { %v961_v52 = vadd.f32 %v1736_v47, %v960_v42 }
 0x1d2   : > { %v975_v57 = vadd.f32 %v974_v45, %v961_v52 }
 0x1d5   : > { %v1072_v31 = vpop.f32.mrf.mxu2 }
 0x1d6   : > { %v1073_v32 = vadd.f32 %v1737_v23, %v1072_v31 }
 0x1d7   : > { %v962_v51 = vpop.f32.mrf.mxu0 }
 0x1d8   : > { %v1087_v34 = vadd.f32 %v1086_v30, %v1073_v32  ;;  %v963_v54 = vadd.f32 %v1736_v47, %v962_v51 }
 0x1da   : > { %v1595_v36 = vmul.f32 -1.442695, %v1087_v34  ;;  %v977_v59 = vadd.f32 %v976_v55, %v963_v54 }
 0x1dc   : > { %1739 = vpow2.f32 %v1595_v36 }
 0x1dd   : > { %v1074_v37 = vpop.f32.mrf.mxu2 }
 0x1de   : > { %v1075_v38 = vadd.f32 %v1737_v23, %v1074_v37 }
 0x1e0   : > { %v1089_v40 = vadd.f32 %v1088_v39, %v1075_v38 }
 0x1e2   : > { %v1740_v41 = vpop.eup %1739  ;;  %v1596_v43 = vmul.f32 -1.442695, %v1089_v40 }
 0x1e3   : > { %v1099_v44 = vadd.f32 1.0, %v1740_v41 }
 0x1e4   : > { %1741 = vpow2.f32 %v1596_v43 }
 0x1e5   : > { %1743 = vrcp.f32 %v1099_v44  ;;  %v1112_v62 = vand.u32 2147483648, %v1099_v44  ;;  %vm1106_vm12 = vweird.f32 %v1099_v44  ;;  %v1110_v2 = vand.u32 2147483647, %v1099_v44 }
 0x1e7   : > { %v1113_v7 = vor.u32 1.1754944e-38, %v1112_v62  ;;  %vm1111_vm15 = vcmp.eq.f32.partialorder %v1110_v2, 8.507059e+37 }
 0x1ea   : > { %v1742_v46 = vpop.eup %1741 }
 0x1eb   : > { %v1744_v48 = vpop.eup %1743  ;;  %v1100_v49 = vadd.f32 1.0, %v1742_v46 }
 0x1ec   : > { %v1102_v50 = vmul.f32 %v1744_v48, %v1099_v44  ;;  %vm1107_vm11 = vweird.f32 %v1744_v48 }
 0x1ed   : > { %1745 = vrcp.f32 %v1100_v49  ;;  %vm1108_vm13 = vmor %vm1106_vm12, %vm1107_vm11  ;;  %v1127_v3 = vand.u32 2147483648, %v1100_v49  ;;  %v1125_v6 = vand.u32 2147483647, %v1100_v49  ;;  %vm1121_vm0 = vweird.f32 %v1100_v49 }
 0x1ee   : > { %v1103_v53 = vsub.f32 1.0, %v1102_v50  ;;  %1747 = vtanh.f32 %v975_v57 }
 0x1ef   : > { %1749 = vtanh.f32 %v977_v59  ;;  %v1128_v10 = vor.u32 1.1754944e-38, %v1127_v3  ;;  %vm1126_vm2 = vcmp.eq.f32.partialorder %v1125_v6, 8.507059e+37 }
 0x1f0   : > { %v1104_v56 = vmul.f32 %v1744_v48, %v1103_v53 }
 0x1f2   : > { %v1105_v61 = vadd.f32 %v1744_v48, %v1104_v56 }
 0x1f3   : > { %v1746_v58 = vpop.eup %1745 }
 0x1f4   : > { %v1117_v60 = vmul.f32 %v1746_v58, %v1100_v49  ;;  %v1109_v4 = vsel %vm1108_vm13, %v1744_v48, %v1105_v61  ;;  %vm1122_vm14 = vweird.f32 %v1746_v58  ;;  %v1748_v11 = vpop.eup %1747 }
 0x1f5   : > { %v1114_v9 = vsel %vm1111_vm15, %v1113_v7, %v1109_v4  ;;  %vm1123_vm1 = vmor %vm1121_vm0, %vm1122_vm14  ;;  %v1750_v13 = vpop.eup %1749 }
 0x1f6   : > { %v1118_v63 = vsub.f32 1.0, %v1117_v60  ;;  %v1131_v15 = vmul.f32 %v1748_v11, %v1114_v9 }
 0x1f8   : > { %v1119_v5 = vmul.f32 %v1746_v58, %v1118_v63 }
 0x1fa   : > { %v1120_v8 = vadd.f32 %v1746_v58, %v1119_v5 }
 0x1fc   : > { %v1124_v12 = vsel %vm1123_vm1, %v1746_v58, %v1120_v8 }
 0x1fd   : > { %v1129_v14 = vsel %vm1126_vm2, %v1128_v10, %v1124_v12 }
 0x1fe   : > { %v1132_v16 = vmul.f32 %v1750_v13, %v1129_v14 }
 0x200   : > { %v1133_v17 = vpack.c.bf16 %v1132_v16, %v1131_v15 }
 0x202   : > { %1605 = vmatmul.msk.bf16.vlgmr.msrb.gmra.mxu1 %vm839_vm8, %v1133_v17 }
 0x27f   : > { %v1168_v20 = vpop.f32.mrf.mxu1 }
 0x280   : > { %v1169_v21 = vadd.f32 %v1738_v18, %v1168_v20 }
 0x282   : > { %v1173_v22 = vadd.f32 %v1169_v21, %v1134_v19 }
 0x284   : > { %1175 = vst.msk [vmem:[#allocation3] sm:$0xff] %vm839_vm8, %v1173_v22 }
 0x287   : > { %v1170_v25 = vpop.f32.mrf.mxu1 }
 0x288   : > { %v1171_v26 = vadd.f32 %v1738_v18, %v1170_v25  ;;  %1180 = sbr.rel (%p1606_p11) target bundleno = 804 (0x324), region = 92 }
 0x28a   : > { %v1174_v27 = vadd.f32 %v1171_v26, %v1135_v24 }
 0x28c   : > { %1176 = vst.msk [vmem:[#allocation3 + $0x8] sm:$0xff] %vm839_vm8, %v1174_v27 }
 0x28d   : > { %v1657_v28 = vld [vmem:[%s1978_s4 + $0x8] sm:$0xff]  ;;  %v1820_v29 = vmov 0   ;;  %v1656_v23 = vld [vmem:[%s1978_s4] sm:$0xff]  ;;  %vm1235_vm3 = vcmask 257024  }
 0x28e   : > { %1751 = vset.pattern.permute.xlu0 %v1820_v29  ;;  %1207 = vmatpush.bf16.msra.mxu0 %v1657_v28  ;;  %v1669_v30 = vld [vmem:[#allocation2 + $0x8] sm:$0xff]   ;;  %v1752_v31 = vld [vmem:[%s691_s16] ss:$0 sm:$0xff] }
 0x28f   : > { %1223 = vperm.xlu0 %1751, %v1949_v0   ;;  %v1666_v32 = vunpack.c.l.bf16 %v1669_v30  ;;  %v1667_v39 = vunpack.c.h.bf16 %v1669_v30 }
 0x292   : > { %1208 = vmatpush.bf16.msra.mxu0 %v1656_v23 }
 0x295   : > { %1615 = vmatmul.msk.bf16.vlgmr.msra.gmra.mxu0 %vm839_vm8, %v1133_v17 }
 0x297   : > { %1228 = vperm.xlu0 %1751, %v1951_v1  }
 0x301   : > { %v1224_v35 = vpop.permute.xlu0 %1223 }
 0x309   : > { %v1229_v43 = vpop.permute.xlu0 %1228 }
 0x312   : > { %v1210_v33 = vpop.f32.mrf.mxu0 }
 0x313   : > { %v1211_v34 = vadd.f32 %v1752_v31, %v1210_v33 }
 0x315   : > { %v1219_v36 = vadd.f32 %v1666_v32, %v1211_v34 }
 0x317   : > { %v1231_v37 = vmul.f32 %v1224_v35, %v1219_v36 }
 0x319   : > { %v1233_v38 = vpack.c.bf16 %v1231_v37, %v1231_v37 }
 0x31a   : > { %v1212_v40 = vpop.f32.mrf.mxu0 }
 0x31b   : > { %1236 = vst.msk [vmem:[#allocation2 + $0x8] sm:$0xf] %vm1235_vm3, %v1233_v38  ;;  %v1213_v41 = vadd.f32 %v1752_v31, %v1212_v40 }
 0x31d   : > { %v1220_v42 = vadd.f32 %v1667_v39, %v1213_v41 }
 0x31f   : > { %v1232_v44 = vmul.f32 %v1229_v43, %v1220_v42 }
 0x321   : > { %v1234_v45 = vpack.c.bf16 %v1232_v44, %v1232_v44 }
 0x323   : > { %1237 = vst.msk [vmem:[#allocation2 + $0xc] sm:$0xf] %vm1235_vm3, %v1234_v45 }
 0x324 PF: > { %p1616_p12 = scmp.ne.s32.totalorder %s1796_s18, 3 }
 0x325   : > { %s2144_s16 = sld [smem:[#allocation17_spill]] (!%p1616_p12) }
 0x326   : > { %1241 = sbr.rel (%p1616_p12) target bundleno = 1079 (0x437), region = 96  ;;  %s2145_s17 = sld [smem:[#allocation18_spill]] (!%p1616_p12) }
 0x32b   : > { %v1821_v46 = vmov 0   ;;  %v1659_v47 = vld [vmem:[%s2144_s16 + $0x8] sm:$0xff]  ;;  %v1658_v48 = vld [vmem:[%s2144_s16] sm:$0xff]  ;;  %v1242_v50 = vld [vmem:[#allocation3] sm:$0xff]  ;;  %vm1296_vm4 = vcmask 64512  }
 0x32c   : > { %1753 = vset.pattern.permute.xlu0 %v1821_v46  ;;  %1286 = vmatpush.bf16.msra.mxu0 %v1659_v47  ;;  %v1243_v51 = vld [vmem:[#allocation3 + $0x8] sm:$0xff] }
 0x32d   : > { %1246 = vperm.xlu0 %1753, %v1949_v0  }
 0x330   : > { %1287 = vmatpush.bf16.msra.mxu0 %v1658_v48 }
 0x335   : > { %1251 = vperm.xlu0 %1753, %v1951_v1   ;;  %v1754_v1 = vld [vmem:[%s2145_s17] ss:$0 sm:$0xff] }
 0x39f   : > { %v1247_v49 = vpop.permute.xlu0 %1246 }
 0x3a0   : > { %v1254_v53 = vmul.f32 %v1247_v49, %v1242_v50 }
 0x3a7   : > { %v1252_v52 = vpop.permute.xlu0 %1251 }
 0x3a8   : > { %v1255_v0 = vmul.f32 %v1252_v52, %v1243_v51 }
 0x3aa   : > { %v1256_v54 = vpack.c.bf16 %v1255_v0, %v1254_v53 }
 0x3ac   : > { %1625 = vmatmul.msk.bf16.vlgmr.msra.gmra.mxu0 %vm839_vm8, %v1256_v54 }
 0x429   : > { %v1289_v55 = vpop.f32.mrf.mxu0 }
 0x42a   : > { %v1290_v56 = vadd.f32 %v1754_v1, %v1289_v55 }
 0x42c   : > { %v1294_v57 = vmul.f32 %v1290_v56, %v1247_v49 }
 0x42e   : > { %1297 = vst.msk [vmem:[%s1996_s6] sm:$0xff] %vm1296_vm4, %v1294_v57 }
 0x431   : > { %v1291_v58 = vpop.f32.mrf.mxu0 }
 0x432   : > { %v1292_v59 = vadd.f32 %v1754_v1, %v1291_v58 }
 0x434   : > { %v1295_v60 = vmul.f32 %v1292_v59, %v1252_v52 }
 0x436   : > { %1298 = vst.msk [vmem:[%s1996_s6 + $0x8] sm:$0xff] %vm1296_vm4, %v1295_v60 }
 0x437 PF: > { %s2146_s27 = sld [smem:[#allocation9_spill]] }
 0x438   : > { %s2147_s18 = sld [smem:[#allocation7_spill]] }
 0x439   : > { %s2148_s19 = sld [smem:[#allocation8_spill]] }
 0x43a   : > { %s2149_s20 = sld [smem:[#allocation10_spill]] }
 0x43b   : > { %s2150_s21 = sld [smem:[#allocation11_spill]] }
 0x43d   : > { %s26_s22 = sadd.s32 1, %s2146_s27  }
 0x43e   : > { %p23_p13 = scmp.ge.s32.totalorder %s26_s22, 10  }
 0x440   :  { %25 = sbr.rel (!%p23_p13) target bundleno = 12 (0xc), region = 154 }
 0x445   :  { %1320 = vsyncpa [#allocation5], 1 }
 0x446   :  { %1322 = vsyncpa [#allocation5 + $0x1], 1 }

</bundles_post_ra>
